<compile_context>
chip_gen: v7x
topology: tpu7x:2x2x1
jax: 0.10.0
libtpu: 0.0.40
codegen_flags: <defaults>
</compile_context>

<pallas_src>
import functools

import jax
import jax.numpy as jnp
import numpy as np
from jax.experimental import pallas as pl
from jax.experimental.pallas import tpu as pltpu


def decoder_kernel(emb_ref, state_in_ref, enc_ref, wlstm_ref, projc_ref, projo_ref,
                   out_ref, state_ref, *, n_layers, hidden_size):
    """One decode step per grid iteration; weights/enc/state stay VMEM-resident."""
    H = hidden_size
    L = n_layers
    t = pl.program_id(0)

    # Seed the resident state slab from the (aliased) HBM input on the first step.
    @pl.when(t == 0)
    def _():
        state_ref[...] = state_in_ref[...]

    # ---- multi-layer LSTM, single time step (PyTorch gate order: i, f, g, o) ----
    x = emb_ref[...]                                              # (Bp, H)
    for layer in range(L):                                        # static unroll, L small
        h = state_ref[:, layer * H:(layer + 1) * H]               # (Bp, H)
        c = state_ref[:, (L + layer) * H:(L + layer + 1) * H]     # (Bp, H)
        w_ih = wlstm_ref[layer, :H, :]                            # (H, 4H)
        w_hh = wlstm_ref[layer, H:2 * H, :]                       # (H, 4H)
        b = wlstm_ref[layer, 2 * H:2 * H + 1, :]                  # (1, 4H) = bih + bhh
        # two small dots instead of a lane-axis concat([x, h]) (no relayout copies)
        gates = (jnp.dot(x, w_ih, preferred_element_type=jnp.float32)
                 + jnp.dot(h, w_hh, preferred_element_type=jnp.float32) + b)
        i_f = jax.nn.sigmoid(gates[:, :2 * H])                    # i and f together
        g = jnp.tanh(gates[:, 2 * H:3 * H])
        o = jax.nn.sigmoid(gates[:, 3 * H:])
        c_new = i_f[:, H:] * c + i_f[:, :H] * g
        h_new = o * jnp.tanh(c_new)
        state_ref[:, layer * H:(layer + 1) * H] = h_new
        state_ref[:, (L + layer) * H:(L + layer + 1) * H] = c_new
        x = h_new                                                 # next layer input (dropout=0)

    # ---- Luong 'dot' attention: VPU mul + reduce (M=1 MXU dots are wasteful) ----
    enc = enc_ref[...]                                            # (Bp, S, H)
    scores = jnp.sum(enc * x[:, None, :], axis=2)                 # (Bp, S)
    attn = jax.nn.softmax(scores, axis=1)                         # softmax over S
    context = jnp.sum(attn[:, :, None] * enc, axis=1)             # (Bp, H)

    # ---- concat linear: tanh([rnn_out | context] @ Wc^T + bc), split dots ----
    wc1 = projc_ref[:H, :]
    wc2 = projc_ref[H:2 * H, :]
    bc = projc_ref[2 * H:2 * H + 1, :]
    concat_out = jnp.tanh(jnp.dot(x, wc1, preferred_element_type=jnp.float32)
                          + jnp.dot(context, wc2, preferred_element_type=jnp.float32)
                          + bc)

    # ---- output projection + softmax over vocab ----
    wo = projo_ref[:H, :]
    bo = projo_ref[H:H + 1, :]
    logits = jnp.dot(concat_out, wo, preferred_element_type=jnp.float32) + bo
    z = jnp.exp(logits - jnp.max(logits, axis=1, keepdims=True))
    # TODO(synk): at real vocab sizes use approx=True (EUP vrcp) + vocab tiling.
    out_ref[...] = z * pl.reciprocal(jnp.sum(z, axis=1, keepdims=True), approx=False)


def pack_params(raw):
    """Pack the PyTorch-style arrays into 3 contiguous, sublane-aligned blobs."""
    L, H, H4 = raw["wih_t"].shape
    O = raw["wo_t"].shape[1]
    # LSTM blob: rows [0:H)=Wih^T, [H:2H)=Whh^T, row 2H = bih+bhh, rest zero-pad.
    w_lstm = jnp.zeros((L, 2 * H + 8, H4), jnp.float32)
    w_lstm = w_lstm.at[:, :H, :].set(raw["wih_t"])
    w_lstm = w_lstm.at[:, H:2 * H, :].set(raw["whh_t"])
    w_lstm = w_lstm.at[:, 2 * H, :].set((raw["bih"] + raw["bhh"])[:, 0, :])
    # concat Linear(2H -> H): rows [0:H)=rnn-half, [H:2H)=context-half, row 2H = bias.
    proj_c = jnp.zeros((2 * H + 8, H), jnp.float32)
    proj_c = proj_c.at[:H, :].set(raw["wc1_t"])
    proj_c = proj_c.at[H:2 * H, :].set(raw["wc2_t"])
    proj_c = proj_c.at[2 * H, :].set(raw["bc"][0])
    # out Linear(H -> O): rows [0:H)=W^T, row H = bias.
    proj_o = jnp.zeros((H + 8, O), jnp.float32)
    proj_o = proj_o.at[:H, :].set(raw["wo_t"])
    proj_o = proj_o.at[H, :].set(raw["bo"][0])
    return {"w_lstm": w_lstm, "proj_c": proj_c, "proj_o": proj_o}


def pack_state(h, c, batch_pad):
    """(L,B,H) h,c -> lane-dense (Bp, 2*L*H) slab: [h_0..h_{L-1} | c_0..c_{L-1}]."""
    st = jnp.concatenate([h, c], axis=0)                          # (2L, B, H)
    st = jnp.pad(st, ((0, 0), (0, batch_pad), (0, 0)))            # (2L, Bp, H)
    Bp = st.shape[1]
    return jnp.transpose(st, (1, 0, 2)).reshape(Bp, -1)


def unpack_state(slab, n_layers, batch, hidden):
    st = slab.reshape(slab.shape[0], 2 * n_layers, hidden)[:batch]
    st = jnp.transpose(st, (1, 0, 2))                             # (2L, B, H)
    return st[:n_layers], st[n_layers:]


@jax.jit
def decoder_forward(packed, embedded_all, h0, c0, enc_sbh):
    """Teacher-forced decode of T steps in ONE pallas_call (grid over steps).

    embedded_all (T,B,H), h0/c0 (L,B,H), enc_sbh (S,B,H) ->
    per-step vocab softmax (T,B,O) plus final (h_n, c_n), each (L,B,H).
    enc transpose/pad and state packing happen once per sequence, not per token.
    """
    T, B, H = embedded_all.shape
    L = h0.shape[0]
    S = enc_sbh.shape[0]
    O = packed["proj_o"].shape[1]
    Bp = max(8, -(-B // 8) * 8)                                   # f32 sublane granularity
    pad = Bp - B

    emb_p = jnp.pad(embedded_all, ((0, 0), (0, pad), (0, 0)))                      # (T,Bp,H)
    enc_p = jnp.pad(jnp.transpose(enc_sbh, (1, 0, 2)), ((0, pad), (0, 0), (0, 0)))  # (Bp,S,H)
    state_in = pack_state(h0, c0, pad)                                             # (Bp, 2LH)

    kernel = functools.partial(decoder_kernel, n_layers=L, hidden_size=H)
    const2 = lambda t: (0, 0)
    const3 = lambda t: (0, 0, 0)

    out_all, state_out = pl.pallas_call(
        kernel,
        grid=(T,),
        in_specs=[
            pl.BlockSpec((None, Bp, H), lambda t: (t, 0, 0)),     # per-step embedding
            pl.BlockSpec((Bp, 2 * L * H), const2),                # initial state slab
            pl.BlockSpec((Bp, S, H), const3),                     # encoder outputs (resident)
            pl.BlockSpec((L, 2 * H + 8, 4 * H), const3),          # fused LSTM weights (resident)
            pl.BlockSpec((2 * H + 8, H), const2),                 # concat projection (resident)
            pl.BlockSpec((H + 8, O), const2),                     # output projection (resident)
        ],
        out_specs=(
            pl.BlockSpec((None, Bp, O), lambda t: (t, 0, 0)),     # per-step vocab softmax
            pl.BlockSpec((Bp, 2 * L * H), const2),                # final state slab (resident)
        ),
        out_shape=(
            jax.ShapeDtypeStruct((T, Bp, O), jnp.float32),
            jax.ShapeDtypeStruct((Bp, 2 * L * H), jnp.float32),
        ),
        # state_in -> state_out written in place; safe because the input slab is
        # only read (DMA'd) before step 0 and the writeback happens after step T-1.
        input_output_aliases={1: 1},
        compiler_params=pltpu.CompilerParams(
            dimension_semantics=("arbitrary",)),                  # recurrent -> sequential steps
    )(emb_p, state_in, enc_p,
      packed["w_lstm"], packed["proj_c"], packed["proj_o"])

    h_n, c_n = unpack_state(state_out, L, B, H)
    return out_all[:, :B], h_n, c_n


# ------------------------- pure-JAX reference ------------------------------

_HI = jax.lax.Precision.HIGHEST


def reference_step(raw, embedded, h0, c0, enc_sbh):
    """Mirror of one Decoder_LSTM.forward call (HIGHEST-precision matmuls)."""
    H = embedded.shape[1]
    x = embedded
    hs, cs = [], []
    for l in range(h0.shape[0]):
        gates = (jnp.dot(x, raw["wih_t"][l], precision=_HI)
                 + jnp.dot(h0[l], raw["whh_t"][l], precision=_HI)
                 + raw["bih"][l] + raw["bhh"][l])
        i = jax.nn.sigmoid(gates[:, :H])
        f = jax.nn.sigmoid(gates[:, H:2 * H])
        g = jnp.tanh(gates[:, 2 * H:3 * H])
        o = jax.nn.sigmoid(gates[:, 3 * H:])
        c = f * c0[l] + i * g
        h = o * jnp.tanh(c)
        hs.append(h)
        cs.append(c)
        x = h
    scores = jnp.sum(x[None, :, :] * enc_sbh, axis=2)             # (S, B) dot_score
    attn = jax.nn.softmax(scores.T, axis=1)                       # (B, S)
    context = jnp.einsum('bs,sbh->bh', attn, enc_sbh, precision=_HI)
    concat_out = jnp.tanh(jnp.dot(x, raw["wc1_t"], precision=_HI)
                          + jnp.dot(context, raw["wc2_t"], precision=_HI) + raw["bc"])
    logits = jnp.dot(concat_out, raw["wo_t"], precision=_HI) + raw["bo"]
    return jax.nn.softmax(logits, axis=1), jnp.stack(hs), jnp.stack(cs)


def reference_decode(raw, tokens, h0, c0, enc_sbh):
    outs = []
    h, c = h0, c0
    for t in range(tokens.shape[0]):
        emb = raw["emb_table"][tokens[t]]
        out, h, c = reference_step(raw, emb, h, c, enc_sbh)
        outs.append(out)
    return jnp.stack(outs), h, c


if __name__ == "__main__":
    # batch, hidden, vocab/output, enc seq len, lstm layers, decode steps
    B, H, O, S, L, T = 2, 32, 128, 8, 2, 4

    key = jax.random.PRNGKey(0)
    keys = jax.random.split(key, 16)

    # Deterministic synthetic parameters (shapes match the PyTorch module);
    # linear/LSTM weights stored pre-transposed: W^T with shape (in, out).
    raw = {
        "emb_table": jax.random.normal(keys[0], (O, H), jnp.float32) * 0.1,
        "wih_t": jax.random.normal(keys[1], (L, H, 4 * H), jnp.float32) * 0.1,
        "whh_t": jax.random.normal(keys[2], (L, H, 4 * H), jnp.float32) * 0.1,
        "bih": jax.random.normal(keys[3], (L, 1, 4 * H), jnp.float32) * 0.1,
        "bhh": jax.random.normal(keys[4], (L, 1, 4 * H), jnp.float32) * 0.1,
        "wc1_t": jax.random.normal(keys[5], (H, H), jnp.float32) * 0.1,   # concat: rnn half
        "wc2_t": jax.random.normal(keys[6], (H, H), jnp.float32) * 0.1,   # concat: context half
        "bc": jax.random.normal(keys[7], (1, H), jnp.float32) * 0.1,
        "wo_t": jax.random.normal(keys[8], (H, O), jnp.float32) * 0.1,
        "bo": jax.random.normal(keys[9], (1, O), jnp.float32) * 0.1,
    }
    packed = pack_params(raw)   # one-time packing, amortized across the decode

    # Inputs: one teacher-forced token (1,B) per decode step, stacked to (T,B).
    tokens = jax.random.randint(keys[10], (T, B), 0, O)
    h0 = jax.random.normal(keys[11], (L, B, H), jnp.float32)
    c0 = jax.random.normal(keys[12], (L, B, H), jnp.float32)
    enc = jax.random.normal(keys[13], (S, B, H), jnp.float32)     # encoder_outputs (S,B,H)

    # nn.Embedding lookup + dropout (p=0 -> identity) stay outside the kernel.
    embedded_all = raw["emb_table"][tokens]                       # (T, B, H)

    ref_out, ref_h, ref_c = reference_decode(raw, tokens, h0, c0, enc)

    out, h_n, c_n = decoder_forward(packed, embedded_all, h0, c0, enc)
    jax.block_until_ready((out, h_n, c_n))

    assert out.shape == (T, B, O) and h_n.shape == (L, B, H) and c_n.shape == (L, B, H)
    np.testing.assert_allclose(np.asarray(out), np.asarray(ref_out), rtol=1e-5, atol=1e-5)
    np.testing.assert_allclose(np.asarray(h_n), np.asarray(ref_h), rtol=1e-5, atol=1e-5)
    np.testing.assert_allclose(np.asarray(c_n), np.asarray(ref_c), rtol=1e-5, atol=1e-5)
    print("KERNEL_OK")
</pallas_src>

<mosaic_0001>
module attributes {stable_mosaic.version = 11 : i64} {
  func.func @decoder_kernel(%arg0: i32, %arg1: memref<1x8x32xf32, #tpu.memory_space<vmem>>, %arg2: memref<8x128xf32, #tpu.memory_space<vmem>>, %arg3: memref<8x8x32xf32, #tpu.memory_space<vmem>>, %arg4: memref<2x72x128xf32, #tpu.memory_space<vmem>>, %arg5: memref<72x32xf32, #tpu.memory_space<vmem>>, %arg6: memref<40x128xf32, #tpu.memory_space<vmem>>, %arg7: memref<1x8x128xf32, #tpu.memory_space<vmem>>, %arg8: memref<8x128xf32, #tpu.memory_space<vmem>>) attributes {dimension_semantics = [#tpu.dimension_semantics<arbitrary>], iteration_bounds = array<i64: 4>, scalar_prefetch = 0 : i64, scratch_operands = 0 : i64, tpu.core_type = #tpu.core_type<tc>, window_params = [{transform_indices = @transform_0, window_bounds = array<i64: 1, 8, 32>}, {pipeline_mode = #tpu.pipeline_mode<synchronous>, transform_indices = @transform_1, window_bounds = array<i64: 8, 128>}, {pipeline_mode = #tpu.pipeline_mode<synchronous>, transform_indices = @transform_2, window_bounds = array<i64: 8, 8, 32>}, {pipeline_mode = #tpu.pipeline_mode<synchronous>, transform_indices = @transform_3, window_bounds = array<i64: 2, 72, 128>}, {pipeline_mode = #tpu.pipeline_mode<synchronous>, transform_indices = @transform_4, window_bounds = array<i64: 72, 32>}, {pipeline_mode = #tpu.pipeline_mode<synchronous>, transform_indices = @transform_5, window_bounds = array<i64: 40, 128>}, {transform_indices = @transform_6, window_bounds = array<i64: 1, 8, 128>}, {pipeline_mode = #tpu.pipeline_mode<synchronous>, transform_indices = @transform_7, window_bounds = array<i64: 8, 128>}]} {
    %c0_i32 = arith.constant 0 : i32
    %0 = arith.cmpi eq, %arg0, %c0_i32 : i32
    %1 = arith.extui %0 : i1 to i32
    %c0_i32_0 = arith.constant 0 : i32
    %2 = arith.cmpi ne, %1, %c0_i32_0 : i32
    scf.if %2 {
      %c0_66 = arith.constant 0 : index
      %c0_67 = arith.constant 0 : index
      %124 = vector.load %arg2[%c0_66, %c0_67] : memref<8x128xf32, #tpu.memory_space<vmem>>, vector<8x128xf32>
      %c0_68 = arith.constant 0 : index
      %c0_69 = arith.constant 0 : index
      %125 = vector.load %arg8[%c0_68, %c0_69] : memref<8x128xf32, #tpu.memory_space<vmem>>, vector<8x128xf32>
      tpu.vector_store %arg8[%c0_68, %c0_69], %124 {strides = array<i32>} : memref<8x128xf32, #tpu.memory_space<vmem>>, vector<8x128xf32>,
    } else {
    }
    %c0 = arith.constant 0 : index
    %c0_1 = arith.constant 0 : index
    %c0_2 = arith.constant 0 : index
    %3 = vector.load %arg1[%c0, %c0_1, %c0_2] : memref<1x8x32xf32, #tpu.memory_space<vmem>>, vector<1x8x32xf32>
    %4 = vector.shape_cast %3 : vector<1x8x32xf32> to vector<8x32xf32>
    %c0_3 = arith.constant 0 : index
    %c0_4 = arith.constant 0 : index
    %5 = vector.load %arg8[%c0_3, %c0_4] : memref<8x128xf32, #tpu.memory_space<vmem>>, vector<8x32xf32>
    %c0_5 = arith.constant 0 : index
    %c64 = arith.constant 64 : index
    %6 = vector.load %arg8[%c0_5, %c64] : memref<8x128xf32, #tpu.memory_space<vmem>>, vector<8x32xf32>
    %c0_6 = arith.constant 0 : index
    %c0_7 = arith.constant 0 : index
    %c0_8 = arith.constant 0 : index
    %7 = vector.load %arg4[%c0_6, %c0_7, %c0_8] : memref<2x72x128xf32, #tpu.memory_space<vmem>>, vector<1x32x128xf32>
    %8 = vector.shape_cast %7 : vector<1x32x128xf32> to vector<32x128xf32>
    %c0_9 = arith.constant 0 : index
    %c32 = arith.constant 32 : index
    %c0_10 = arith.constant 0 : index
    %9 = vector.load %arg4[%c0_9, %c32, %c0_10] : memref<2x72x128xf32, #tpu.memory_space<vmem>>, vector<1x32x128xf32>
    %10 = vector.shape_cast %9 : vector<1x32x128xf32> to vector<32x128xf32>
    %c0_11 = arith.constant 0 : index
    %c64_12 = arith.constant 64 : index
    %c0_13 = arith.constant 0 : index
    %11 = vector.load %arg4[%c0_11, %c64_12, %c0_13] : memref<2x72x128xf32, #tpu.memory_space<vmem>>, vector<1x1x128xf32>
    %12 = vector.shape_cast %11 : vector<1x1x128xf32> to vector<1x128xf32>
    %cst = arith.constant dense<0.000000e+00> : vector<8x128xf32>
    %13 = tpu.matmul %4, %8, %cst {dimension_numbers = #tpu.dot_dimension_numbers<[1], [0], [0], [1], [0, 0, 1, 1], [], []>} : vector<8x32xf32>, vector<32x128xf32>, vector<8x128xf32> -> vector<8x128xf32>
    %cst_14 = arith.constant dense<0.000000e+00> : vector<8x128xf32>
    %14 = tpu.matmul %5, %10, %cst_14 {dimension_numbers = #tpu.dot_dimension_numbers<[1], [0], [0], [1], [0, 0, 1, 1], [], []>} : vector<8x32xf32>, vector<32x128xf32>, vector<8x128xf32> -> vector<8x128xf32>
    %15 = arith.addf %13, %14 : vector<8x128xf32>
    %16 = vector.broadcast %12 : vector<1x128xf32> to vector<8x128xf32>
    %17 = arith.addf %15, %16 : vector<8x128xf32>
    %18 = vector.extract_strided_slice %17 {offsets = [0, 0], sizes = [8, 64], strides = [1, 1]} : vector<8x128xf32> to vector<8x64xf32>
    %19 = arith.negf %18 : vector<8x64xf32>
    %20 = math.exp %19 : vector<8x64xf32>
    %cst_15 = arith.constant 1.000000e+00 : f32
    %21 = vector.broadcast %cst_15 : f32 to vector<8x64xf32>
    %22 = arith.addf %21, %20 : vector<8x64xf32>
    %23 = arith.divf %21, %22 : vector<8x64xf32>
    %24 = vector.extract_strided_slice %17 {offsets = [0, 64], sizes = [8, 32], strides = [1, 1]} : vector<8x128xf32> to vector<8x32xf32>
    %25 = math.tanh %24 : vector<8x32xf32>
    %26 = vector.extract_strided_slice %17 {offsets = [0, 96], sizes = [8, 32], strides = [1, 1]} : vector<8x128xf32> to vector<8x32xf32>
    %27 = arith.negf %26 : vector<8x32xf32>
    %28 = math.exp %27 : vector<8x32xf32>
    %cst_16 = arith.constant 1.000000e+00 : f32
    %29 = vector.broadcast %cst_16 : f32 to vector<8x32xf32>
    %30 = arith.addf %29, %28 : vector<8x32xf32>
    %31 = arith.divf %29, %30 : vector<8x32xf32>
    %32 = vector.extract_strided_slice %23 {offsets = [0, 32], sizes = [8, 32], strides = [1, 1]} : vector<8x64xf32> to vector<8x32xf32>
    %33 = arith.mulf %32, %6 : vector<8x32xf32>
    %34 = vector.extract_strided_slice %23 {offsets = [0, 0], sizes = [8, 32], strides = [1, 1]} : vector<8x64xf32> to vector<8x32xf32>
    %35 = arith.mulf %34, %25 : vector<8x32xf32>
    %36 = arith.addf %33, %35 : vector<8x32xf32>
    %37 = math.tanh %36 : vector<8x32xf32>
    %38 = arith.mulf %31, %37 : vector<8x32xf32>
    %c0_17 = arith.constant 0 : index
    %c0_18 = arith.constant 0 : index
    %39 = vector.load %arg8[%c0_17, %c0_18] : memref<8x128xf32, #tpu.memory_space<vmem>>, vector<8x32xf32>
    tpu.vector_store %arg8[%c0_17, %c0_18], %38 {strides = array<i32>} : memref<8x128xf32, #tpu.memory_space<vmem>>, vector<8x32xf32>,
    %c0_19 = arith.constant 0 : index
    %c64_20 = arith.constant 64 : index
    %40 = vector.load %arg8[%c0_19, %c64_20] : memref<8x128xf32, #tpu.memory_space<vmem>>, vector<8x32xf32>
    tpu.vector_store %arg8[%c0_19, %c64_20], %36 {strides = array<i32>} : memref<8x128xf32, #tpu.memory_space<vmem>>, vector<8x32xf32>,
    %c0_21 = arith.constant 0 : index
    %c32_22 = arith.constant 32 : index
    %41 = vector.load %arg8[%c0_21, %c32_22] : memref<8x128xf32, #tpu.memory_space<vmem>>, vector<8x32xf32>
    %c0_23 = arith.constant 0 : index
    %c96 = arith.constant 96 : index
    %42 = vector.load %arg8[%c0_23, %c96] : memref<8x128xf32, #tpu.memory_space<vmem>>, vector<8x32xf32>
    %c1 = arith.constant 1 : index
    %c0_24 = arith.constant 0 : index
    %c0_25 = arith.constant 0 : index
    %43 = vector.load %arg4[%c1, %c0_24, %c0_25] : memref<2x72x128xf32, #tpu.memory_space<vmem>>, vector<1x32x128xf32>
    %44 = vector.shape_cast %43 : vector<1x32x128xf32> to vector<32x128xf32>
    %c1_26 = arith.constant 1 : index
    %c32_27 = arith.constant 32 : index
    %c0_28 = arith.constant 0 : index
    %45 = vector.load %arg4[%c1_26, %c32_27, %c0_28] : memref<2x72x128xf32, #tpu.memory_space<vmem>>, vector<1x32x128xf32>
    %46 = vector.shape_cast %45 : vector<1x32x128xf32> to vector<32x128xf32>
    %c1_29 = arith.constant 1 : index
    %c64_30 = arith.constant 64 : index
    %c0_31 = arith.constant 0 : index
    %47 = vector.load %arg4[%c1_29, %c64_30, %c0_31] : memref<2x72x128xf32, #tpu.memory_space<vmem>>, vector<1x1x128xf32>
    %48 = vector.shape_cast %47 : vector<1x1x128xf32> to vector<1x128xf32>
    %cst_32 = arith.constant dense<0.000000e+00> : vector<8x128xf32>
    %49 = tpu.matmul %38, %44, %cst_32 {dimension_numbers = #tpu.dot_dimension_numbers<[1], [0], [0], [1], [0, 0, 1, 1], [], []>} : vector<8x32xf32>, vector<32x128xf32>, vector<8x128xf32> -> vector<8x128xf32>
    %cst_33 = arith.constant dense<0.000000e+00> : vector<8x128xf32>
    %50 = tpu.matmul %41, %46, %cst_33 {dimension_numbers = #tpu.dot_dimension_numbers<[1], [0], [0], [1], [0, 0, 1, 1], [], []>} : vector<8x32xf32>, vector<32x128xf32>, vector<8x128xf32> -> vector<8x128xf32>
    %51 = arith.addf %49, %50 : vector<8x128xf32>
    %52 = vector.broadcast %48 : vector<1x128xf32> to vector<8x128xf32>
    %53 = arith.addf %51, %52 : vector<8x128xf32>
    %54 = vector.extract_strided_slice %53 {offsets = [0, 0], sizes = [8, 64], strides = [1, 1]} : vector<8x128xf32> to vector<8x64xf32>
    %55 = arith.negf %54 : vector<8x64xf32>
    %56 = math.exp %55 : vector<8x64xf32>
    %cst_34 = arith.constant 1.000000e+00 : f32
    %57 = vector.broadcast %cst_34 : f32 to vector<8x64xf32>
    %58 = arith.addf %57, %56 : vector<8x64xf32>
    %59 = arith.divf %57, %58 : vector<8x64xf32>
    %60 = vector.extract_strided_slice %53 {offsets = [0, 64], sizes = [8, 32], strides = [1, 1]} : vector<8x128xf32> to vector<8x32xf32>
    %61 = math.tanh %60 : vector<8x32xf32>
    %62 = vector.extract_strided_slice %53 {offsets = [0, 96], sizes = [8, 32], strides = [1, 1]} : vector<8x128xf32> to vector<8x32xf32>
    %63 = arith.negf %62 : vector<8x32xf32>
    %64 = math.exp %63 : vector<8x32xf32>
    %cst_35 = arith.constant 1.000000e+00 : f32
    %65 = vector.broadcast %cst_35 : f32 to vector<8x32xf32>
    %66 = arith.addf %65, %64 : vector<8x32xf32>
    %67 = arith.divf %65, %66 : vector<8x32xf32>
    %68 = vector.extract_strided_slice %59 {offsets = [0, 32], sizes = [8, 32], strides = [1, 1]} : vector<8x64xf32> to vector<8x32xf32>
    %69 = arith.mulf %68, %42 : vector<8x32xf32>
    %70 = vector.extract_strided_slice %59 {offsets = [0, 0], sizes = [8, 32], strides = [1, 1]} : vector<8x64xf32> to vector<8x32xf32>
    %71 = arith.mulf %70, %61 : vector<8x32xf32>
    %72 = arith.addf %69, %71 : vector<8x32xf32>
    %73 = math.tanh %72 : vector<8x32xf32>
    %74 = arith.mulf %67, %73 : vector<8x32xf32>
    %c0_36 = arith.constant 0 : index
    %c32_37 = arith.constant 32 : index
    %75 = vector.load %arg8[%c0_36, %c32_37] : memref<8x128xf32, #tpu.memory_space<vmem>>, vector<8x32xf32>
    tpu.vector_store %arg8[%c0_36, %c32_37], %74 {strides = array<i32>} : memref<8x128xf32, #tpu.memory_space<vmem>>, vector<8x32xf32>,
    %c0_38 = arith.constant 0 : index
    %c96_39 = arith.constant 96 : index
    %76 = vector.load %arg8[%c0_38, %c96_39] : memref<8x128xf32, #tpu.memory_space<vmem>>, vector<8x32xf32>
    tpu.vector_store %arg8[%c0_38, %c96_39], %72 {strides = array<i32>} : memref<8x128xf32, #tpu.memory_space<vmem>>, vector<8x32xf32>,
    %c0_40 = arith.constant 0 : index
    %c0_41 = arith.constant 0 : index
    %c0_42 = arith.constant 0 : index
    %77 = vector.load %arg3[%c0_40, %c0_41, %c0_42] : memref<8x8x32xf32, #tpu.memory_space<vmem>>, vector<8x8x32xf32>
    %78 = vector.shape_cast %74 : vector<8x32xf32> to vector<8x1x32xf32>
    %79 = vector.broadcast %78 : vector<8x1x32xf32> to vector<8x8x32xf32>
    %80 = arith.mulf %77, %79 : vector<8x8x32xf32>
    %cst_43 = arith.constant dense<0.000000e+00> : vector<8x8xf32>
    %81 = vector.multi_reduction <add>, %80, %cst_43 [2] : vector<8x8x32xf32> to vector<8x8xf32>
    %cst_44 = arith.constant dense<0xFF800000> : vector<8xf32>
    %82 = vector.multi_reduction <maximumf>, %81, %cst_44 [1] : vector<8x8xf32> to vector<8xf32>
    %cst_45 = arith.constant 0xFF800000 : f32
    %83 = vector.broadcast %cst_45 : f32 to vector<8xf32>
    %84 = arith.maximumf %83, %82 : vector<8xf32>
    %85 = vector.shape_cast %84 : vector<8xf32> to vector<8x1xf32>
    %86 = vector.broadcast %85 : vector<8x1xf32> to vector<8x8xf32>
    %87 = arith.subf %81, %86 : vector<8x8xf32>
    %88 = math.exp %87 : vector<8x8xf32>
    %cst_46 = arith.constant dense<0.000000e+00> : vector<8xf32>
    %89 = vector.multi_reduction <add>, %88, %cst_46 [1] : vector<8x8xf32> to vector<8xf32>
    %90 = vector.shape_cast %89 : vector<8xf32> to vector<8x1xf32>
    %91 = vector.broadcast %90 : vector<8x1xf32> to vector<8x8xf32>
    %92 = arith.divf %88, %91 : vector<8x8xf32>
    %93 = vector.shape_cast %92 : vector<8x8xf32> to vector<8x8x1xf32>
    %94 = vector.broadcast %93 : vector<8x8x1xf32> to vector<8x8x32xf32>
    %95 = arith.mulf %94, %77 : vector<8x8x32xf32>
    %cst_47 = arith.constant dense<0.000000e+00> : vector<8x32xf32>
    %96 = vector.multi_reduction <add>, %95, %cst_47 [1] : vector<8x8x32xf32> to vector<8x32xf32>
    %c0_48 = arith.constant 0 : index
    %c0_49 = arith.constant 0 : index
    %97 = vector.load %arg5[%c0_48, %c0_49] : memref<72x32xf32, #tpu.memory_space<vmem>>, vector<32x32xf32>
    %c32_50 = arith.constant 32 : index
    %c0_51 = arith.constant 0 : index
    %98 = vector.load %arg5[%c32_50, %c0_51] : memref<72x32xf32, #tpu.memory_space<vmem>>, vector<32x32xf32>
    %c64_52 = arith.constant 64 : index
    %c0_53 = arith.constant 0 : index
    %99 = vector.load %arg5[%c64_52, %c0_53] : memref<72x32xf32, #tpu.memory_space<vmem>>, vector<1x32xf32>
    %cst_54 = arith.constant dense<0.000000e+00> : vector<8x32xf32>
    %100 = tpu.matmul %74, %97, %cst_54 {dimension_numbers = #tpu.dot_dimension_numbers<[1], [0], [0], [1], [0, 0, 1, 1], [], []>} : vector<8x32xf32>, vector<32x32xf32>, vector<8x32xf32> -> vector<8x32xf32>
    %cst_55 = arith.constant dense<0.000000e+00> : vector<8x32xf32>
    %101 = tpu.matmul %96, %98, %cst_55 {dimension_numbers = #tpu.dot_dimension_numbers<[1], [0], [0], [1], [0, 0, 1, 1], [], []>} : vector<8x32xf32>, vector<32x32xf32>, vector<8x32xf32> -> vector<8x32xf32>
    %102 = arith.addf %100, %101 : vector<8x32xf32>
    %103 = vector.broadcast %99 : vector<1x32xf32> to vector<8x32xf32>
    %104 = arith.addf %102, %103 : vector<8x32xf32>
    %105 = math.tanh %104 : vector<8x32xf32>
    %c0_56 = arith.constant 0 : index
    %c0_57 = arith.constant 0 : index
    %106 = vector.load %arg6[%c0_56, %c0_57] : memref<40x128xf32, #tpu.memory_space<vmem>>, vector<32x128xf32>
    %c32_58 = arith.constant 32 : index
    %c0_59 = arith.constant 0 : index
    %107 = vector.load %arg6[%c32_58, %c0_59] : memref<40x128xf32, #tpu.memory_space<vmem>>, vector<1x128xf32>
    %cst_60 = arith.constant dense<0.000000e+00> : vector<8x128xf32>
    %108 = tpu.matmul %105, %106, %cst_60 {dimension_numbers = #tpu.dot_dimension_numbers<[1], [0], [0], [1], [0, 0, 1, 1], [], []>} : vector<8x32xf32>, vector<32x128xf32>, vector<8x128xf32> -> vector<8x128xf32>
    %109 = vector.broadcast %107 : vector<1x128xf32> to vector<8x128xf32>
    %110 = arith.addf %108, %109 : vector<8x128xf32>
    %cst_61 = arith.constant dense<0xFF800000> : vector<8xf32>
    %111 = vector.multi_reduction <maximumf>, %110, %cst_61 [1] : vector<8x128xf32> to vector<8xf32>
    %112 = vector.shape_cast %111 : vector<8xf32> to vector<8x1xf32>
    %113 = vector.broadcast %112 : vector<8x1xf32> to vector<8x128xf32>
    %114 = arith.subf %110, %113 : vector<8x128xf32>
    %115 = math.exp %114 : vector<8x128xf32>
    %cst_62 = arith.constant dense<0.000000e+00> : vector<8xf32>
    %116 = vector.multi_reduction <add>, %115, %cst_62 [1] : vector<8x128xf32> to vector<8xf32>
    %117 = vector.shape_cast %116 : vector<8xf32> to vector<8x1xf32>
    %118 = tpu.reciprocal %117 : vector<8x1xf32> -> vector<8x1xf32>
    %119 = vector.broadcast %118 : vector<8x1xf32> to vector<8x128xf32>
    %120 = arith.mulf %115, %119 : vector<8x128xf32>
    %c0_63 = arith.constant 0 : index
    %c0_64 = arith.constant 0 : index
    %c0_65 = arith.constant 0 : index
    %121 = vector.load %arg7[%c0_63, %c0_64, %c0_65] : memref<1x8x128xf32, #tpu.memory_space<vmem>>, vector<1x8x128xf32>
    %122 = vector.shape_cast %121 : vector<1x8x128xf32> to vector<8x128xf32>
    %123 = vector.shape_cast %120 : vector<8x128xf32> to vector<1x8x128xf32>
    tpu.vector_store %arg7[%c0_63, %c0_64, %c0_65], %123 {strides = array<i32>} : memref<1x8x128xf32, #tpu.memory_space<vmem>>, vector<1x8x128xf32>,
    return
  }
  func.func @transform_0(%arg0: i32) -> (i32, i32, i32) {
    %c0_i32 = arith.constant 0 : i32
    %c0_i32_0 = arith.constant 0 : i32
    %c0_i32_1 = arith.constant 0 : i32
    return %arg0, %c0_i32, %c0_i32_0 : i32, i32, i32
  }
  func.func @transform_1(%arg0: i32) -> (i32, i32) {
    %c0_i32 = arith.constant 0 : i32
    %c0_i32_0 = arith.constant 0 : i32
    %c0_i32_1 = arith.constant 0 : i32
    return %c0_i32, %c0_i32_0 : i32, i32
  }
  func.func @transform_2(%arg0: i32) -> (i32, i32, i32) {
    %c0_i32 = arith.constant 0 : i32
    %c0_i32_0 = arith.constant 0 : i32
    %c0_i32_1 = arith.constant 0 : i32
    %c0_i32_2 = arith.constant 0 : i32
    return %c0_i32, %c0_i32_0, %c0_i32_1 : i32, i32, i32
  }
  func.func @transform_3(%arg0: i32) -> (i32, i32, i32) {
    %c0_i32 = arith.constant 0 : i32
    %c0_i32_0 = arith.constant 0 : i32
    %c0_i32_1 = arith.constant 0 : i32
    %c0_i32_2 = arith.constant 0 : i32
    return %c0_i32, %c0_i32_0, %c0_i32_1 : i32, i32, i32
  }
  func.func @transform_4(%arg0: i32) -> (i32, i32) {
    %c0_i32 = arith.constant 0 : i32
    %c0_i32_0 = arith.constant 0 : i32
    %c0_i32_1 = arith.constant 0 : i32
    return %c0_i32, %c0_i32_0 : i32, i32
  }
  func.func @transform_5(%arg0: i32) -> (i32, i32) {
    %c0_i32 = arith.constant 0 : i32
    %c0_i32_0 = arith.constant 0 : i32
    %c0_i32_1 = arith.constant 0 : i32
    return %c0_i32, %c0_i32_0 : i32, i32
  }
  func.func @transform_6(%arg0: i32) -> (i32, i32, i32) {
    %c0_i32 = arith.constant 0 : i32
    %c0_i32_0 = arith.constant 0 : i32
    %c0_i32_1 = arith.constant 0 : i32
    return %arg0, %c0_i32, %c0_i32_0 : i32, i32, i32
  }
  func.func @transform_7(%arg0: i32) -> (i32, i32) {
    %c0_i32 = arith.constant 0 : i32
    %c0_i32_0 = arith.constant 0 : i32
    %c0_i32_1 = arith.constant 0 : i32
    return %c0_i32, %c0_i32_0 : i32, i32
  }
}

</mosaic_0001>

<bundles_post_ra>
// kernel: decoder_forward.1
= control target key start
LH: loop header
LB: loop body
LE: loop exit
PB: predicated region body
PF: predicated region fallthrough
CT: control target
= control target key end

     0   :  { %s1829_s24 = smov 0   ;;  %s2240_s0 = inlined_call_operand.vmem [shape: f32[4,8,32], index: 0, kind: input, shape index: {}]   ;;  %s2241_s1 = inlined_call_operand.vmem [shape: f32[8,128], index: 1, kind: input, shape index: {}, may-alias: {1,7}]   ;;  %s2242_s2 = inlined_call_operand.vmem [shape: f32[8,8,32], index: 2, kind: input, shape index: {}]   ;;  %s2243_s3 = inlined_call_operand.vmem [shape: f32[2,72,128], index: 3, kind: input, shape index: {}]   ;;  %s2244_s4 = inlined_call_operand.vmem [shape: f32[72,32], index: 4, kind: input, shape index: {}]   ;;  %s2245_s5 = inlined_call_operand.vmem [shape: f32[40,128], index: 5, kind: input, shape index: {}]   ;;  %s2246_s6 = inlined_call_operand.vmem [shape: f32[4,8,128], index: 6, kind: output, shape index: {0}]   ;;  %s2247_s7 = inlined_call_operand.vmem [shape: f32[8,128], index: 7, kind: output, shape index: {1}, may-alias: {1,7}]  }
   0x1 LB: > { %s1515_s25 = sadd.s32 4294967295, %s1779_s24   ;;  %p1519_p0 = scmp.ge.s32.totalorder %s1779_s24, 1  ;;  %s1779_s24 = sphi %s1829_s24, %s18_s24  }
   0x2   : > { %p234_p1 = scmp.lt.s32.totalorder %s1779_s24, 5 }
   0x4   : > { %p235_p2 = pnand %p1519_p0, %p234_p1 }
   0x5   : > { %p264_p3 = scmp.lt.s32.totalorder (!%p235_p2), %s1515_s25, 3  ;;  %p1522_p4 = scmp.ne.s32.totalorder (!%p235_p2), %s1515_s25, 0 }
   0x6   : > { %238 = sbr.rel (%p235_p2) target bundleno = 3132 (0xc3c), region = 44 }
   0xd   : > { %s265_s26 = scalar_select %p264_p3, %s1515_s25, 3 }
   0xe   : > { %275 = sbr.rel (%p1522_p4) target bundleno = 21 (0x15), region = 48  ;;  %v276_v0 = vld [vmem:[%s2241_s1] sm:$0xff] (!%p1522_p4) }
   0xf   : > { %s1520_s27 = sshll.u32 %s265_s26, 3  ;;  %277 = vst [vmem:[%s2247_s7] sm:$0xff] (!%p1522_p4), %v276_v0 }
  0x10   : > { %s1840_s30 = scalar_lea.vmem %s2240_s0, %s1520_s27  ;;  %s1845_s10 = scalar_lea.vmem %s2246_s6, %s1520_s27 }
  0x15 PF: > { %v284_v1 = vld [vmem:[%s2243_s3 + $0x20] sm:$0xff]  ;;  %v285_v2 = vld [vmem:[%s2243_s3 + $0x28] sm:$0xff]  ;;  %v1781_v4 = vmov 0.0|0.0   ;;  %v286_v7 = vld [vmem:[%s2243_s3 + $0x30] sm:$0xff]  ;;  %vm1782_vm0 = vmmov 0   ;;  %v1783_v12 = vmov 0.0  }
  0x16   : > { %v280_v3 = vld [vmem:[%s2243_s3] sm:$0xff]  ;;  %1659 = vmatprep.subr.bf16.mxu0 %v1781_v4  ;;  %1665 = vmatprep.subr.bf16.mxu1 %v1781_v4  ;;  %v1660_v5 = vpack.c.bf16 %v285_v2, %v284_v1  ;;  %v281_v6 = vld [vmem:[%s2243_s3 + $0x8] sm:$0xff]  ;;  %v287_v8 = vld [vmem:[%s2243_s3 + $0x38] sm:$0xff]  ;;  %vm289_vm1 = vcmask 261120   ;;  %s1785_s15 = smov 96   ;;  %s1786_s16 = smov 32  }
  0x17   : > { %v1666_v9 = vpack.c.bf16 %v281_v6, %v280_v3  ;;  %v282_v10 = vld [vmem:[%s2243_s3 + $0x10] sm:$0xff]  ;;  %v283_v11 = vld [vmem:[%s2243_s3 + $0x18] sm:$0xff]  ;;  %1590 = vmatprep.mubr.msk.f32.mxu0 %vm1782_vm0, %v1783_v12  ;;  %1601 = vmatprep.mubr.msk.f32.mxu1 %vm1782_vm0, %v1783_v12  ;;  %v1663_v13 = vpack.c.bf16 %v287_v8, %v286_v7  ;;  %v279_v15 = vld [vmem:[%s2247_s7] sm:$0xff]  ;;  %vm477_vm2 = vcmask 785920   ;;  %vm868_vm3 = vcmask 1041409  }
  0x18   : > { %1661 = vmatpush3.bf16.msra.mxu0 %v1660_v5  ;;  %v1669_v14 = vpack.c.bf16 %v283_v11, %v282_v10  ;;  %v278_v16 = vld [vmem:[%s1840_s30] sm:$0xff]  ;;  %s1784_s30 = smov 64   ;;  %v1527_v35 = vld [vmem:[%s2243_s3 + $0x48] sm:$0xff]  ;;  %v1528_v36 = vld [vmem:[%s2243_s3 + $0x50] sm:$0xff]  ;;  %v1787_v10 = vmov 1966171168  }
  0x19   : > { %1667 = vmatpush3.bf16.msra.mxu1 %v1666_v9  ;;  %1662 = vmatprep.subr.bf16.mxu0 %v1781_v4  ;;  %v1525_v18 = vld [vmem:[%s2243_s3 + $0x40] ss:$0 sm:$0xff]  ;;  %v1529_v37 = vld [vmem:[%s2243_s3 + $0x58] sm:$0xff]  ;;  %v1678_v38 = vpack.c.bf16 %v1528_v36, %v1527_v35  ;;  %v1531_v44 = vld [vmem:[%s2243_s3 + $0x68] sm:$0xff]  ;;  %v691_v11 = vunpack.c.l.s4 %v1787_v10  ;;  %vm870_vm4 = vcmask 1042434   ;;  %vm872_vm5 = vcmask 1043459  }
  0x1a   : > { %1668 = vmatprep.subr.bf16.mxu1 %v1781_v4  ;;  %v1530_v39 = vld [vmem:[%s2243_s3 + $0x60] sm:$0xff]  ;;  %v1532_v45 = vld [vmem:[%s2243_s3 + $0x70] sm:$0xff]  ;;  %v1533_v46 = vld [vmem:[%s2243_s3 + $0x78] sm:$0xff]  ;;  %vm874_vm6 = vcmask 1044484   ;;  %vm876_vm7 = vcmask 1045509   ;;  %vm878_vm8 = vcmask 1046534  }
  0x1b   : > { %v1681_v40 = vpack.c.bf16 %v1530_v39, %v1529_v37  ;;  %v1672_v47 = vpack.c.bf16 %v1532_v45, %v1531_v44  ;;  %v1534_v48 = vld [vmem:[%s2243_s3 + $0x80] sm:$0xff]  ;;  %v1538_v56 = vld [vmem:[%s2243_s3 + $0x88] ss:$0 sm:$0xff]  ;;  %vm880_vm9 = vcmask 1047559   ;;  %vm883_vm10 = vcmask 64512  }
  0x1c   : > { %1664 = vmatpush3.bf16.msra.mxu0 %v1663_v13  ;;  %v1675_v49 = vpack.c.bf16 %v1534_v48, %v1533_v46  ;;  %v693_v13 = vlaneseq  ;;  %v2003_v46 = vld [vmem:[%s2242_s2 + $0x10] sm:$0xff]  ;;  %vm673_vm11 = vcmask 523520   ;;  %vm679_vm12 = vcmask 1048320  }
  0x1d   : > { %1670 = vmatpush3.bf16.msra.mxu1 %v1669_v14  ;;  %1671 = vmatprep.subr.bf16.mxu0 %v1781_v4  ;;  %v692_v14 = vunpack.c.0.s8 %v691_v11 }
  0x1e   : > { %1677 = vmatprep.subr.bf16.mxu1 %v1781_v4  ;;  %v835_v11 = vand.u32 127, %v693_v13 }
  0x1f   : > { %1591 = vmatmul.mubr.msk.f32.vlgmr.msra.gmra.mrb[0].mxu0 %vm289_vm1, %v279_v15 }
  0x20   : > { %1602 = vmatmul.mubr.msk.f32.vlgmr.msra.gmra.mrb[0].mxu1 %vm289_vm1, %v278_v16  ;;  %1612 = vmatprep.mubr.msk.f32.mxu0 %vm1782_vm0, %v1783_v12 }
  0x21   : > { %1623 = vmatprep.mubr.msk.f32.mxu1 %vm1782_vm0, %v1783_v12  ;;  %1679 = vmatpush3.bf16.msra.mxu1 %v1678_v38 }
  0x22   : > { %1680 = vmatprep.subr.bf16.mxu1 %v1781_v4  ;;  %1673 = vmatpush3.bf16.msra.mxu0 %v1672_v47 }
  0x23   : > { %1674 = vmatprep.subr.bf16.mxu0 %v1781_v4 }
  0x25   : > { %1682 = vmatpush3.bf16.msra.mxu1 %v1681_v40 }
  0x26   : > { %1689 = vmatprep.subr.bf16.mxu1 %v1781_v4  ;;  %1676 = vmatpush3.bf16.msra.mxu0 %v1675_v49 }
  0x27   : > { %1683 = vmatprep.subr.bf16.mxu0 %v1781_v4 }
  0xf2   : > { %v359_v17 = vpop.f32.mrb[0].mxu0 }
  0xf3   : > { %v432_v19 = vpop.f32.mrb[0].mxu1  ;;  %v1592_v20 = vpop.f32.mrb[1].mxu0 }
  0xf4   : > { %v433_v21 = vadd.f32 %v432_v19, %v359_v17  ;;  %v1603_v22 = vpop.f32.mrb[1].mxu1 }
  0xf6   : > { %v440_v23 = vadd.f32 %v1525_v18, %v433_v21 }
  0xf8   : > { %1719 = vtanh.f32 %v440_v23  ;;  %v1526_v25 = vmul.f32 -1.442695, %v440_v23 }
  0xfa   : > { %1721 = vpow2.f32 %v1526_v25 }
 0x102   : > { %v1720_v24 = vpop.eup %1719 }
 0x103   : > { %453 = vrot.lane.b32.xlu0 %v1720_v24, %s1784_s30 }
 0x104   : > { %v1722_v26 = vpop.eup %1721 }
 0x105   : > { %v444_v27 = vadd.f32 1.0, %v1722_v26 }
 0x107   : > { %448 = vrot.lane.b32.xlu0 %v279_v15, %s1785_s15  ;;  %1723 = vrcp.f32 %v444_v27  ;;  %v1962_v15 = vshrl.u32 %v693_v13, 7 }
 0x109   : > { %v695_v16 = vsub.s32 %v692_v14, %v1962_v15  ;;  %v1971_v21 = vsub.s32 0, %v1962_v15  ;;  %v2047_v14 = vsub.s32 %v835_v11, %v1962_v15 }
 0x111   : > { %v1724_v28 = vpop.eup %1723 }
 0x175   : > { %v454_v29 = vpop.permute.xlu0 %453 }
 0x176   : > { %v456_v30 = vmul.f32 %v1724_v28, %v454_v29 }
 0x178   : > { %458 = vrot.lane.b32.xlu1 %v456_v30, %s1786_s16 }
 0x179   : > { %v449_v31 = vpop.permute.xlu0 %448 }
 0x17a   : > { %v451_v32 = vmul.f32 %v1724_v28, %v449_v31 }
 0x1ea   : > { %v459_v33 = vpop.permute.xlu1 %458 }
 0x1eb   : > { %v461_v34 = vadd.f32 %v459_v33, %v451_v32 }
 0x1ed   : > { %1725 = vtanh.f32 %v461_v34 }
 0x1f7   : > { %v1726_v41 = vpop.eup %1725 }
 0x1f8   : > { %464 = vrot.lane.b32.xlu1 %v1726_v41, %s1784_s30  ;;  %v1992_v41 = vld [vmem:[%s2242_s2] sm:$0xff] }
 0x1fc   : > { %474 = vrot.lane.b32.xlu1 %v461_v34, %s1786_s16 }
 0x26a   : > { %v465_v42 = vpop.permute.xlu1 %464 }
 0x26b   : > { %v467_v43 = vmul.f32 %v1724_v28, %v465_v42 }
 0x26d   : > { %469 = vrot.lane.b32.xlu0 %v467_v43, %s1786_s16  ;;  %v1997_v43 = vld [vmem:[%s2242_s2 + $0x8] sm:$0xff] }
 0x26e   : > { %v475_v51 = vpop.permute.xlu1 %474 }
 0x2df   : > { %v470_v50 = vpop.permute.xlu0 %469 }
 0x2e0   : > { %472 = vst.msk [vmem:[%s2247_s7] sm:$0xff] %vm289_vm1, %v470_v50  ;;  %1624 = vmatmul.mubr.msk.f32.vlgmr.msra.gmra.mrb[2].mxu1 %vm289_vm1, %v470_v50  ;;  %v2010_v50 = vld [vmem:[%s2242_s2 + $0x18] sm:$0xff] }
 0x2e1   : > { %478 = vst.msk [vmem:[%s2247_s7] sm:$0xff] %vm477_vm2, %v475_v51  ;;  %1645 = vmatprep.mubr.msk.f32.mxu1 %vm1782_vm0, %v1783_v12 }
 0x2e8   : > { %v479_v52 = vld [vmem:[%s2247_s7] sm:$0xff] }
 0x2e9   : > { %491 = vrot.lane.b32.xlu0 %v479_v52, %s1785_s15 }
 0x2ed   : > { %649 = vrot.lane.b32.xlu0 %v479_v52, %s1784_s30 }
 0x35b   : > { %v492_v53 = vpop.permute.xlu0 %491 }
 0x35c   : > { %1613 = vmatmul.mubr.msk.f32.vlgmr.msra.gmra.mrb[2].mxu0 %vm289_vm1, %v492_v53 }
 0x35d   : > { %1634 = vmatprep.mubr.msk.f32.mxu0 %vm1782_vm0, %v1783_v12 }
 0x35f   : > { %v650_v5 = vpop.permute.xlu0 %649 }
 0x3b3   : > { %v633_v54 = vpop.f32.mrb[2].mxu1 }
 0x3b4   : > { %v1625_v55 = vpop.f32.mrb[3].mxu1 }
 0x42f   : > { %v561_v57 = vpop.f32.mrb[2].mxu0 }
 0x430   : > { %v634_v58 = vadd.f32 %v633_v54, %v561_v57  ;;  %v1614_v59 = vpop.f32.mrb[3].mxu0  ;;  %v2017_v54 = vld [vmem:[%s2242_s2 + $0x20] sm:$0xff]  ;;  %v2023_v57 = vld [vmem:[%s2242_s2 + $0x28] sm:$0xff] }
 0x432   : > { %v641_v60 = vadd.f32 %v1538_v56, %v634_v58 }
 0x434   : > { %1727 = vtanh.f32 %v641_v60  ;;  %v1539_v62 = vmul.f32 -1.442695, %v641_v60 }
 0x436   : > { %1729 = vpow2.f32 %v1539_v62  ;;  %v2031_v62 = vld [vmem:[%s2242_s2 + $0x30] sm:$0xff] }
 0x43e   : > { %v1728_v61 = vpop.eup %1727 }
 0x43f   : > { %654 = vrot.lane.b32.xlu1 %v1728_v61, %s1784_s30 }
 0x440   : > { %v1730_v63 = vpop.eup %1729 }
 0x441   : > { %v645_v0 = vadd.f32 1.0, %v1730_v63 }
 0x443   : > { %1731 = vrcp.f32 %v645_v0 }
 0x44d   : > { %v1732_v1 = vpop.eup %1731 }
 0x44e   : > { %v652_v6 = vmul.f32 %v1732_v1, %v650_v5 }
 0x4b1   : > { %v655_v2 = vpop.permute.xlu1 %654 }
 0x4b2   : > { %v657_v3 = vmul.f32 %v1732_v1, %v655_v2 }
 0x4b4   : > { %659 = vrot.lane.b32.xlu1 %v657_v3, %s1786_s16 }
 0x526   : > { %v660_v7 = vpop.permute.xlu1 %659 }
 0x527   : > { %v1957_v8 = vadd.f32 %v660_v7, %v652_v6 }
 0x529   : > { %1733 = vtanh.f32 %v1957_v8 }
 0x533   : > { %v1734_v9 = vpop.eup %1733 }
 0x534   : > { %665 = vrot.lane.b32.xlu0 %v1734_v9, %s1784_s30 }
 0x5a6   : > { %v666_v17 = vpop.permute.xlu0 %665 }
 0x5a7   : > { %v1965_v18 = vmul.f32 %v1732_v1, %v666_v17  ;;  %v2037_v1 = vld [vmem:[%s2242_s2 + $0x38] sm:$0xff] }
 0x5a9   : > { %v689_v19 = vcombine.high %v1965_v18, %v1965_v18  ;;  %v696_v20 = vrot.slane %v1965_v18, %v695_v16 }
 0x5ab   : > { %v712_v22 = vrot.slane %v696_v20, %v695_v16  ;;  %v704_v23 = vcombine.high %v696_v20, %v696_v20  ;;  %v703_v24 = vrot.slane %v689_v19, %v695_v16 }
 0x5ad   : > { %v741_v25 = vrot.slane %v712_v22, %v1971_v21  ;;  %v726_v26 = vrot.slane %v704_v23, %v695_v16  ;;  %v734_v27 = vcombine.high %v712_v22, %v712_v22  ;;  %v705_v30 = vcombine.high %v703_v24, %v703_v24 }
 0x5ae   : > { %v719_v32 = vrot.slane %v703_v24, %v695_v16 }
 0x5af   : > { %770 = vrot.lane.b32.xlu1 %v741_v25, %s1786_s16  ;;  %v745_v28 = vrot.slane %v726_v26, %v1971_v21  ;;  %v736_v29 = vcombine.high %v726_v26, %v726_v26  ;;  %v749_v31 = vrot.slane %v734_v27, %v1971_v21  ;;  %v733_v34 = vrot.slane %v705_v30, %v695_v16 }
 0x5b0   : > { %v757_v35 = vrot.slane %v719_v32, %v1971_v21  ;;  %v735_v36 = vcombine.high %v719_v32, %v719_v32 }
 0x5b1   : > { %772 = vrot.lane.b32.xlu0 %v745_v28, %s1786_s16  ;;  %v753_v33 = vrot.slane %v736_v29, %v1971_v21  ;;  %v761_v37 = vrot.slane %v733_v34, %v1971_v21  ;;  %v737_v38 = vcombine.high %v733_v34, %v733_v34 }
 0x5b2   : > { %v765_v39 = vrot.slane %v735_v36, %v1971_v21 }
 0x5b3   : > { %774 = vrot.lane.b32.xlu1 %v749_v31, %s1786_s16  ;;  %v769_v40 = vrot.slane %v737_v38, %v1971_v21 }
 0x5b5   : > { %776 = vrot.lane.b32.xlu0 %v753_v33, %s1786_s16 }
 0x5b7   : > { %778 = vrot.lane.b32.xlu1 %v757_v35, %s1786_s16 }
 0x5b9   : > { %780 = vrot.lane.b32.xlu0 %v761_v37, %s1786_s16 }
 0x5bb   : > { %782 = vrot.lane.b32.xlu1 %v765_v39, %s1786_s16 }
 0x5bd   : > { %784 = vrot.lane.b32.xlu0 %v769_v40, %s1786_s16 }
 0x621   : > { %v771_v42 = vpop.permute.xlu1 %770 }
 0x622   : > { %v794_v44 = vmul.f32 %v771_v42, %v1992_v41  ;;  %v1788_v42 = vmov 0  }
 0x623   : > { %v773_v45 = vpop.permute.xlu0 %772  ;;  %1718 = vset.pattern.permute.xlu0 %v1788_v42  ;;  %1717 = vset.pattern.permute.xlu1 %v1788_v42 }
 0x624   : > { %v795_v47 = vmul.f32 %v773_v45, %v1997_v43  ;;  %v802_v48 = vsel %vm289_vm1, %v794_v44, 0.0  ;;  %v894_v44 = vsub.s32 1, %v1962_v15  ;;  %v898_v45 = vsub.s32 2, %v1962_v15 }
 0x625   : > { %v775_v49 = vpop.permute.xlu1 %774  ;;  %803 = vadd.xlane.f32.xlu1 %v802_v48 }
 0x626   : > { %v796_v51 = vmul.f32 %v775_v49, %v2003_v46  ;;  %v805_v52 = vsel %vm289_vm1, %v795_v47, 0.0  ;;  %v902_v47 = vsub.s32 3, %v1962_v15 }
 0x627   : > { %v777_v53 = vpop.permute.xlu0 %776  ;;  %806 = vadd.xlane.f32.xlu0 %v805_v52 }
 0x628   : > { %v797_v55 = vmul.f32 %v777_v53, %v2010_v50  ;;  %v808_v60 = vsel %vm289_vm1, %v796_v51, 0.0  ;;  %v906_v53 = vsub.s32 4, %v1962_v15 }
 0x629   : > { %v779_v56 = vpop.permute.xlu1 %778 }
 0x62a   : > { %v798_v58 = vmul.f32 %v779_v56, %v2017_v54  ;;  %v811_v59 = vsel %vm289_vm1, %v797_v55, 0.0 }
 0x62b   : > { %812 = vadd.xlane.f32.xlu1 %v811_v59  ;;  %v781_v61 = vpop.permute.xlu0 %780  ;;  %809 = vadd.xlane.f32.xlu0 %v808_v60 }
 0x62c   : > { %v799_v63 = vmul.f32 %v781_v61, %v2023_v57  ;;  %v814_v5 = vsel %vm289_vm1, %v798_v58, 0.0 }
 0x62d   : > { %v783_v0 = vpop.permute.xlu1 %782 }
 0x62e   : > { %v800_v2 = vmul.f32 %v783_v0, %v2031_v62  ;;  %v817_v3 = vsel %vm289_vm1, %v799_v63, 0.0  ;;  %v910_v63 = vsub.s32 5, %v1962_v15 }
 0x62f   : > { %818 = vadd.xlane.f32.xlu1 %v817_v3  ;;  %815 = vadd.xlane.f32.xlu0 %v814_v5  ;;  %v785_v6 = vpop.permute.xlu0 %784  ;;  %v914_v5 = vsub.s32 6, %v1962_v15 }
 0x630   : > { %v801_v7 = vmul.f32 %v785_v6, %v2037_v1  ;;  %v820_v9 = vsel %vm289_vm1, %v800_v2, 0.0 }
 0x632   : > { %v823_v10 = vsel %vm289_vm1, %v801_v7, 0.0 }
 0x633   : > { %821 = vadd.xlane.f32.xlu0 %v820_v9  ;;  %824 = vadd.xlane.f32.xlu1 %v823_v10  ;;  %v918_v10 = vsub.s32 7, %v1962_v15 }
 0x6b2   : > { %v804_v16 = vpop.xlane.xlu1 %803 }
 0x6b3   : > { %v839_v20 = vrot.slane %v804_v16, %v2047_v14 }
 0x6b4   : > { %v807_v17 = vpop.xlane.xlu0 %806 }
 0x6b5   : > { %v843_v19 = vrot.slane %v807_v17, %v2047_v14 }
 0x6b7   : > { %v869_v25 = vsel %vm868_vm3, %v843_v19, %v839_v20 }
 0x6b8   : > { %v813_v22 = vpop.xlane.xlu1 %812  ;;  %v810_v23 = vpop.xlane.xlu0 %809 }
 0x6b9   : > { %v847_v24 = vrot.slane %v810_v23, %v2047_v14  ;;  %v851_v26 = vrot.slane %v813_v22, %v2047_v14 }
 0x6bb   : > { %v871_v13 = vsel %vm870_vm4, %v847_v24, %v869_v25 }
 0x6bc   : > { %v819_v27 = vpop.xlane.xlu1 %818  ;;  %v816_v28 = vpop.xlane.xlu0 %815  ;;  %v873_v31 = vsel %vm872_vm5, %v851_v26, %v871_v13 }
 0x6bd   : > { %v855_v29 = vrot.slane %v816_v28, %v2047_v14  ;;  %v859_v30 = vrot.slane %v819_v27, %v2047_v14 }
 0x6bf   : > { %v875_v32 = vsel %vm874_vm6, %v855_v29, %v873_v31 }
 0x6c0   : > { %v825_v33 = vpop.xlane.xlu1 %824  ;;  %v822_v34 = vpop.xlane.xlu0 %821  ;;  %v877_v37 = vsel %vm876_vm7, %v859_v30, %v875_v32 }
 0x6c1   : > { %v867_v35 = vrot.slane %v825_v33, %v2047_v14  ;;  %v863_v36 = vrot.slane %v822_v34, %v2047_v14 }
 0x6c3   : > { %v879_v38 = vsel %vm878_vm8, %v863_v36, %v877_v37 }
 0x6c4   : > { %v881_v39 = vsel %vm880_vm9, %v867_v35, %v879_v38 }
 0x6c5   : > { %v884_v40 = vsel %vm883_vm10, %v881_v39, -inf }
 0x6c6   : > { %885 = vmax.xlane.f32.xlu0 %v884_v40 }
 0x753   : > { %v886_v48 = vpop.xlane.xlu0 %885 }
 0x754   : > { %v891_v49 = vrot.slane %v886_v48, %v1971_v21  ;;  %v895_v51 = vrot.slane %v886_v48, %v894_v44  ;;  %v899_v52 = vrot.slane %v886_v48, %v898_v45  ;;  %v903_v55 = vrot.slane %v886_v48, %v902_v47 }
 0x755   : > { %v907_v0 = vrot.slane %v886_v48, %v906_v53  ;;  %v911_v6 = vrot.slane %v886_v48, %v910_v63  ;;  %v915_v11 = vrot.slane %v886_v48, %v914_v5 }
 0x756   : > { %v928_v56 = vsub.f32 %v804_v16, %v891_v49  ;;  %v929_v58 = vsub.f32 %v807_v17, %v895_v51  ;;  %v930_v59 = vsub.f32 %v810_v23, %v899_v52  ;;  %v931_v2 = vsub.f32 %v813_v22, %v903_v55 }
 0x757   : > { %v932_v7 = vsub.f32 %v816_v28, %v907_v0  ;;  %v933_v16 = vsub.f32 %v819_v27, %v911_v6  ;;  %v919_v22 = vrot.slane %v886_v48, %v918_v10  ;;  %v934_v23 = vsub.f32 %v822_v34, %v915_v11  ;;  %v1189_v34 = vld [vmem:[%s2244_s4 + $0x8] sm:$0xff] }
 0x758   : > { %v936_v60 = vmul.f32 1.442695, %v928_v56  ;;  %v938_v61 = vmul.f32 1.442695, %v929_v58  ;;  %v940_v3 = vmul.f32 1.442695, %v930_v59 }
 0x759   : > { %v942_v9 = vmul.f32 1.442695, %v931_v2  ;;  %v944_v17 = vmul.f32 1.442695, %v932_v7  ;;  %v946_v24 = vmul.f32 1.442695, %v933_v16  ;;  %v935_v26 = vsub.f32 %v825_v33, %v919_v22 }
 0x75a   : > { %1735 = vpow2.f32 %v936_v60  ;;  %v948_v13 = vmul.f32 1.442695, %v934_v23  ;;  %v1188_v33 = vld [vmem:[%s2244_s4] sm:$0xff]  ;;  %v1191_v22 = vld [vmem:[%s2244_s4 + $0x18] sm:$0xff] }
 0x75b   : > { %1737 = vpow2.f32 %v938_v61  ;;  %v950_v28 = vmul.f32 1.442695, %v935_v26  ;;  %v1690_v35 = vpack.c.bf16 %v1189_v34, %v1188_v33 }
 0x75c   : > { %1739 = vpow2.f32 %v940_v3 }
 0x75d   : > { %1741 = vpow2.f32 %v942_v9  ;;  %1691 = vmatpush3.bf16.msra.mxu1 %v1690_v35 }
 0x75e   : > { %1743 = vpow2.f32 %v944_v17  ;;  %1692 = vmatprep.subr.bf16.mxu1 %v1781_v4  ;;  %v1190_v17 = vld [vmem:[%s2244_s4 + $0x10] sm:$0xff] }
 0x75f   : > { %1745 = vpow2.f32 %v946_v24  ;;  %v1693_v23 = vpack.c.bf16 %v1191_v22, %v1190_v17 }
 0x760   : > { %1747 = vpow2.f32 %v948_v13 }
 0x761   : > { %1749 = vpow2.f32 %v950_v28  ;;  %1694 = vmatpush3.bf16.msra.mxu1 %v1693_v23 }
 0x764   : > { %v2085_v19 = vpop.eup %1735 }
 0x765   : > { %v2087_v20 = vpop.eup %1737  ;;  %961 = vperm.xlu1 %1717, %v2085_v19  }
 0x766   : > { %964 = vperm.xlu0 %1718, %v2087_v20   ;;  %v2093_v25 = vpop.eup %1739 }
 0x767   : > { %v2096_v27 = vpop.eup %1741 }
 0x768   : > { %v2099_v29 = vpop.eup %1743 }
 0x769   : > { %967 = vperm.xlu1 %1717, %v2093_v25   ;;  %v2102_v30 = vpop.eup %1745 }
 0x76a   : > { %v2105_v31 = vpop.eup %1747 }
 0x76b   : > { %v2108_v32 = vpop.eup %1749 }
 0x76d   : > { %970 = vperm.xlu1 %1717, %v2096_v27  }
 0x771   : > { %973 = vperm.xlu1 %1717, %v2099_v29  }
 0x775   : > { %976 = vperm.xlu1 %1717, %v2102_v30  }
 0x779   : > { %979 = vperm.xlu1 %1717, %v2105_v31  }
 0x77d   : > { %982 = vperm.xlu1 %1717, %v2108_v32  }
 0x7e4   : > { %v962_v36 = vpop.permute.xlu1 %961 }
 0x7e5   : > { %v965_v40 = vpop.permute.xlu0 %964  ;;  %v987_v49 = vrot.slane %v962_v36, %v2047_v14 }
 0x7e6   : > { %v991_v48 = vrot.slane %v965_v40, %v2047_v14 }
 0x7e8   : > { %v968_v37 = vpop.permute.xlu1 %967  ;;  %v1016_v58 = vsel %vm868_vm3, %v991_v48, %v987_v49 }
 0x7e9   : > { %v995_v51 = vrot.slane %v968_v37, %v2047_v14 }
 0x7eb   : > { %v1017_v60 = vsel %vm870_vm4, %v995_v51, %v1016_v58 }
 0x7ec   : > { %v971_v38 = vpop.permute.xlu1 %970 }
 0x7ed   : > { %v999_v52 = vrot.slane %v971_v38, %v2047_v14 }
 0x7ef   : > { %v1018_v0 = vsel %vm872_vm5, %v999_v52, %v1017_v60 }
 0x7f0   : > { %v974_v39 = vpop.permute.xlu1 %973 }
 0x7f1   : > { %v1003_v55 = vrot.slane %v974_v39, %v2047_v14 }
 0x7f3   : > { %v1019_v2 = vsel %vm874_vm6, %v1003_v55, %v1018_v0 }
 0x7f4   : > { %v977_v42 = vpop.permute.xlu1 %976 }
 0x7f5   : > { %v1007_v59 = vrot.slane %v977_v42, %v2047_v14 }
 0x7f7   : > { %v1020_v6 = vsel %vm876_vm7, %v1007_v59, %v1019_v2 }
 0x7f8   : > { %v980_v56 = vpop.permute.xlu1 %979 }
 0x7f9   : > { %v1011_v61 = vrot.slane %v980_v56, %v2047_v14 }
 0x7fb   : > { %v1021_v9 = vsel %vm878_vm8, %v1011_v61, %v1020_v6 }
 0x7fc   : > { %v983_v3 = vpop.permute.xlu1 %982 }
 0x7fd   : > { %v1015_v7 = vrot.slane %v983_v3, %v2047_v14 }
 0x7ff   : > { %v1022_v11 = vsel %vm880_vm9, %v1015_v7, %v1021_v9 }
 0x800   : > { %v1024_v16 = vsel %vm883_vm10, %v1022_v11, 0.0 }
 0x801   : > { %1025 = vadd.xlane.f32.xlu1 %v1024_v16 }
 0x812   : > { %1284 = vrot.lane.b32.xlu1 %v1965_v18, %s1786_s16 }
 0x88e   : > { %v1026_v14 = vpop.xlane.xlu1 %1025 }
 0x88f   : > { %v1031_v24 = vrot.slane %v1026_v14, %v1971_v21  ;;  %v1035_v26 = vrot.slane %v1026_v14, %v894_v44  ;;  %v1039_v28 = vrot.slane %v1026_v14, %v898_v45  ;;  %v1043_v33 = vrot.slane %v1026_v14, %v902_v47 }
 0x890   : > { %v1047_v21 = vrot.slane %v1026_v14, %v906_v53  ;;  %v1051_v36 = vrot.slane %v1026_v14, %v910_v63  ;;  %v1055_v47 = vrot.slane %v1026_v14, %v914_v5  ;;  %v1059_v53 = vrot.slane %v1026_v14, %v918_v10  ;;  %v1192_v10 = vld [vmem:[%s2244_s4 + $0x20] sm:$0xff] }
 0x891   : > { %1751 = vrcp.f32 %v1031_v24 }
 0x892   : > { %v1285_v13 = vpop.permute.xlu1 %1284  ;;  %1753 = vrcp.f32 %v1035_v26 }
 0x893   : > { %1646 = vmatmul.mubr.msk.f32.vlgmr.msra.gmra.mrb[4].mxu1 %vm289_vm1, %v1285_v13  ;;  %1755 = vrcp.f32 %v1039_v28 }
 0x894   : > { %1757 = vrcp.f32 %v1043_v33 }
 0x895   : > { %1759 = vrcp.f32 %v1047_v21 }
 0x896   : > { %1761 = vrcp.f32 %v1051_v36 }
 0x897   : > { %1763 = vrcp.f32 %v1055_v47 }
 0x898   : > { %1765 = vrcp.f32 %v1059_v53 }
 0x89b   : > { %v1752_v34 = vpop.eup %1751 }
 0x89c   : > { %v1069_v35 = vmul.f32 %v1752_v34, %v2085_v19  ;;  %v1754_v44 = vpop.eup %1753 }
 0x89d   : > { %v1071_v37 = vmul.f32 %v1754_v44, %v2087_v20  ;;  %v1756_v45 = vpop.eup %1755 }
 0x89e   : > { %1086 = vperm.xlu0 %1718, %v1069_v35   ;;  %v1073_v38 = vmul.f32 %v1756_v45, %v2093_v25  ;;  %v1758_v39 = vpop.eup %1757 }
 0x89f   : > { %v1075_v19 = vmul.f32 %v1758_v39, %v2096_v27  ;;  %v1760_v40 = vpop.eup %1759  ;;  %v1193_v27 = vld [vmem:[%s2244_s4 + $0x28] sm:$0xff] }
 0x8a0   : > { %v1077_v63 = vmul.f32 %v1760_v40, %v2099_v29  ;;  %v1762_v20 = vpop.eup %1761  ;;  %v1194_v29 = vld [vmem:[%s2244_s4 + $0x30] sm:$0xff] }
 0x8a1   : > { %v1079_v42 = vmul.f32 %v1762_v20, %v2102_v30  ;;  %v1764_v5 = vpop.eup %1763  ;;  %v1684_v30 = vpack.c.bf16 %v1193_v27, %v1192_v10 }
 0x8a2   : > { %1091 = vperm.xlu0 %1718, %v1071_v37   ;;  %v1081_v25 = vmul.f32 %v1764_v5, %v2105_v31  ;;  %v1766_v48 = vpop.eup %1765  ;;  %v1195_v31 = vld [vmem:[%s2244_s4 + $0x38] sm:$0xff] }
 0x8a3   : > { %v1083_v15 = vmul.f32 %v1766_v48, %v2108_v32  ;;  %1685 = vmatpush3.bf16.msra.mxu0 %v1684_v30  ;;  %v1687_v32 = vpack.c.bf16 %v1195_v31, %v1194_v29 }
 0x8a4   : > { %1686 = vmatprep.subr.bf16.mxu0 %v1781_v4 }
 0x8a6   : > { %1096 = vperm.xlu0 %1718, %v1073_v38  }
 0x8a7   : > { %1688 = vmatpush3.bf16.msra.mxu0 %v1687_v32 }
 0x8a8   : > { %1695 = vmatprep.subr.bf16.mxu0 %v1781_v4 }
 0x8aa   : > { %1101 = vperm.xlu0 %1718, %v1075_v19  }
 0x8ae   : > { %1106 = vperm.xlu0 %1718, %v1077_v63  }
 0x8b2   : > { %1111 = vperm.xlu0 %1718, %v1079_v42  }
 0x8b6   : > { %1116 = vperm.xlu0 %1718, %v1081_v25  }
 0x8ba   : > { %1121 = vperm.xlu0 %1718, %v1083_v15  }
 0x91d   : > { %v1087_v49 = vpop.permute.xlu0 %1086 }
 0x91e   : > { %v1124_v56 = vmul.f32 %v1087_v49, %v1992_v41 }
 0x920   : > { %v1132_v0 = vsel %vm289_vm1, %v1124_v56, 0.0 }
 0x921   : > { %v1092_v51 = vpop.permute.xlu0 %1091  ;;  %v1133_v9 = vrot.slane %v1132_v0, 4 }
 0x922   : > { %v1125_v52 = vmul.f32 %v1092_v51, %v1997_v43 }
 0x923   : > { %v1134_v22 = vadd.f32 %v1133_v9, %v1132_v0 }
 0x924   : > { %v1139_v59 = vsel %vm289_vm1, %v1125_v52, 0.0 }
 0x925   : > { %v1097_v55 = vpop.permute.xlu0 %1096  ;;  %v1140_v3 = vrot.slane %v1139_v59, 4  ;;  %v1135_v34 = vrot.slane %v1134_v22, 2 }
 0x926   : > { %v1126_v58 = vmul.f32 %v1097_v55, %v2003_v46 }
 0x927   : > { %v1141_v16 = vadd.f32 %v1140_v3, %v1139_v59  ;;  %v1136_v39 = vadd.f32 %v1135_v34, %v1134_v22  ;;  %v1364_v22 = vld [vmem:[%s2245_s5] sm:$0xff] }
 0x928   : > { %v1146_v60 = vsel %vm289_vm1, %v1126_v58, 0.0 }
 0x929   : > { %v1102_v61 = vpop.permute.xlu0 %1101  ;;  %v1147_v6 = vrot.slane %v1146_v60, 4 }
 0x92a   : > { %v1127_v2 = vmul.f32 %v1102_v61, %v2010_v50  ;;  %v1142_v50 = vrot.slane %v1141_v16, 2 }
 0x92b   : > { %v1148_v46 = vadd.f32 %v1147_v6, %v1146_v60 }
 0x92c   : > { %v1153_v7 = vsel %vm289_vm1, %v1127_v2, 0.0  ;;  %v1143_v37 = vadd.f32 %v1142_v50, %v1141_v16  ;;  %v1542_v50 = vld [vmem:[%s2244_s4 + $0x40] ss:$0 sm:$0xff] }
 0x92d   : > { %v1154_v43 = vrot.slane %v1153_v7, 4  ;;  %v1107_v11 = vpop.permute.xlu0 %1106  ;;  %v1149_v28 = vrot.slane %v1148_v46, 2 }
 0x92e   : > { %v1128_v41 = vmul.f32 %v1107_v11, %v2017_v54  ;;  %v1144_v42 = vrot.slane %v1143_v37, 1 }
 0x92f   : > { %v1155_v23 = vadd.f32 %v1154_v43, %v1153_v7  ;;  %v1150_v47 = vadd.f32 %v1149_v28, %v1148_v46 }
 0x930   : > { %v1160_v17 = vsel %vm289_vm1, %v1128_v41, 0.0  ;;  %v1145_v31 = vadd.f32 %v1144_v42, %v1143_v37 }
 0x931   : > { %v1161_v14 = vrot.slane %v1160_v17, 4  ;;  %v1112_v24 = vpop.permute.xlu0 %1111  ;;  %v1156_v21 = vrot.slane %v1155_v23, 2  ;;  %v1151_v48 = vrot.slane %v1150_v47, 1 }
 0x932   : > { %v1129_v26 = vmul.f32 %v1112_v24, %v2023_v57 }
 0x933   : > { %v1162_v13 = vadd.f32 %v1161_v14, %v1160_v17  ;;  %v1157_v53 = vadd.f32 %v1156_v21, %v1155_v23  ;;  %v1152_v52 = vadd.f32 %v1151_v48, %v1150_v47  ;;  %v1365_v23 = vld [vmem:[%s2245_s5 + $0x8] sm:$0xff]  ;;  %v1366_v14 = vld [vmem:[%s2245_s5 + $0x10] sm:$0xff] }
 0x934   : > { %v1167_v33 = vsel %vm289_vm1, %v1129_v26, 0.0  ;;  %v1696_v24 = vpack.c.bf16 %v1365_v23, %v1364_v22  ;;  %v1367_v26 = vld [vmem:[%s2245_s5 + $0x18] sm:$0xff] }
 0x935   : > { %v1168_v35 = vrot.slane %v1167_v33, 4  ;;  %v1117_v44 = vpop.permute.xlu0 %1116  ;;  %v1163_v54 = vrot.slane %v1162_v13, 2  ;;  %v1158_v10 = vrot.slane %v1157_v53, 1 }
 0x936   : > { %v1130_v36 = vmul.f32 %v1117_v44, %v2031_v62  ;;  %v1137_v62 = vrot.slane %v1136_v39, 1 }
 0x937   : > { %v1169_v45 = vadd.f32 %v1168_v35, %v1167_v33  ;;  %v1164_v63 = vadd.f32 %v1163_v54, %v1162_v13  ;;  %v1159_v56 = vadd.f32 %v1158_v10, %v1157_v53  ;;  %v1543_v35 = vld [vmem:[%s2245_s5 + $0x20] ss:$0 sm:$0xff] }
 0x938   : > { %v1174_v38 = vsel %vm289_vm1, %v1130_v36, 0.0  ;;  %v1138_v55 = vadd.f32 %v1137_v62, %v1136_v39 }
 0x939   : > { %v1170_v57 = vrot.slane %v1169_v45, 2  ;;  %v1175_v19 = vrot.slane %v1174_v38, 4  ;;  %v1122_v40 = vpop.permute.xlu0 %1121  ;;  %v1165_v30 = vrot.slane %v1164_v63, 1 }
 0x93a   : > { %v1131_v20 = vmul.f32 %v1122_v40, %v2037_v1  ;;  %v1205_v60 = vsel %vm868_vm3, %v1145_v31, %v1138_v55 }
 0x93b   : > { %v1171_v5 = vadd.f32 %v1170_v57, %v1169_v45  ;;  %v1176_v25 = vadd.f32 %v1175_v19, %v1174_v38  ;;  %v1166_v59 = vadd.f32 %v1165_v30, %v1164_v63  ;;  %v1206_v2 = vsel %vm870_vm4, %v1152_v52, %v1205_v60 }
 0x93c   : > { %v1181_v15 = vsel %vm289_vm1, %v1131_v20, 0.0  ;;  %v1207_v6 = vsel %vm872_vm5, %v1159_v56, %v1206_v2 }
 0x93d   : > { %v1177_v27 = vrot.slane %v1176_v25, 2  ;;  %v1182_v29 = vrot.slane %v1181_v15, 4  ;;  %v1172_v32 = vrot.slane %v1171_v5, 1  ;;  %v1208_v9 = vsel %vm874_vm6, %v1166_v59, %v1207_v6 }
 0x93f   : > { %v1178_v49 = vadd.f32 %v1177_v27, %v1176_v25  ;;  %v1183_v51 = vadd.f32 %v1182_v29, %v1181_v15  ;;  %v1173_v61 = vadd.f32 %v1172_v32, %v1171_v5 }
 0x941   : > { %v1179_v58 = vrot.slane %v1178_v49, 1  ;;  %v1184_v1 = vrot.slane %v1183_v51, 2  ;;  %v1209_v11 = vsel %vm876_vm7, %v1173_v61, %v1208_v9 }
 0x943   : > { %v1185_v0 = vadd.f32 %v1184_v1, %v1183_v51  ;;  %v1180_v3 = vadd.f32 %v1179_v58, %v1178_v49 }
 0x945   : > { %v1186_v7 = vrot.slane %v1185_v0, 1  ;;  %v1210_v41 = vsel %vm878_vm8, %v1180_v3, %v1209_v11 }
 0x947   : > { %v1187_v43 = vadd.f32 %v1186_v7, %v1185_v0 }
 0x949   : > { %v1211_v16 = vsel %vm880_vm9, %v1187_v43, %v1210_v41 }
 0x94a   : > { %1635 = vmatmul.mubr.msk.f32.vlgmr.msra.gmra.mrb[4].mxu0 %vm289_vm1, %v1211_v16 }
 0x94b   : > { %1656 = vmatprep.mubr.msk.f32.mxu0 %vm1782_vm0, %v1783_v12  ;;  %1697 = vmatpush3.bf16.msra.mxu0 %v1696_v24  ;;  %v1699_v12 = vpack.c.bf16 %v1367_v26, %v1366_v14 }
 0x94c   : > { %1698 = vmatprep.subr.bf16.mxu0 %v1781_v4 }
 0x94f   : > { %1700 = vmatpush3.bf16.msra.mxu0 %v1699_v12 }
 0x966   : > { %v1354_v46 = vpop.f32.mrb[4].mxu1 }
 0x967   : > { %v1647_v17 = vpop.f32.mrb[5].mxu1 }
 0xa1d   : > { %v1280_v13 = vpop.f32.mrb[4].mxu0 }
 0xa1e   : > { %v1355_v28 = vadd.f32 %v1354_v46, %v1280_v13  ;;  %v1636_v33 = vpop.f32.mrb[5].mxu0 }
 0xa20   : > { %v1362_v34 = vadd.f32 %v1542_v50, %v1355_v28 }
 0xa22   : > { %1767 = vtanh.f32 %v1362_v34 }
 0xa2c   : > { %v1768_v21 = vpop.eup %1767 }
 0xa2d   : > { %1657 = vmatmul.mubr.msk.f32.vlgmr.msra.gmra.mrb[6].mxu0 %vm289_vm1, %v1768_v21 }
 0xb00   : > { %v1442_v44 = vpop.f32.mrb[6].mxu0 }
 0xb01   : > { %v1443_v54 = vadd.f32 %v1543_v35, %v1442_v44  ;;  %v1658_v4 = vpop.f32.mrb[7].mxu0 }
 0xb03   : > { %1446 = vmax.xlane.f32.xlu0 %v1443_v54 }
 0xb19   : > { %670 = vrot.lane.b32.xlu0 %v1965_v18, %s1784_s30 }
 0xb90   : > { %v1447_v36 = vpop.xlane.xlu0 %1446 }
 0xb91   : > { %v1448_v37 = vsub.f32 %v1443_v54, %v1447_v36 }
 0xb93   : > { %v1449_v45 = vmul.f32 1.442695, %v1448_v37 }
 0xb94   : > { %v671_v47 = vpop.permute.xlu0 %670 }
 0xb95   : > { %1769 = vpow2.f32 %v1449_v45  ;;  %674 = vst.msk [vmem:[%s2247_s7] sm:$0xff] %vm673_vm11, %v671_v47 }
 0xb9f   : > { %v1770_v38 = vpop.eup %1769 }
 0xba0   : > { %1451 = vadd.xlane.f32.xlu1 %v1770_v38 }
 0xbb1   : > { %676 = vrot.lane.b32.xlu1 %v1957_v8, %s1784_s30 }
 0xc2d   : > { %v1452_v39 = vpop.xlane.xlu1 %1451 }
 0xc2e   : > { %1771 = vrcp.f32 %v1452_v39 }
 0xc31   : > { %v677_v18 = vpop.permute.xlu1 %676 }
 0xc32   : > { %680 = vst.msk [vmem:[%s2247_s7] sm:$0xff] %vm679_vm12, %v677_v18 }
 0xc38   : > { %v1772_v53 = vpop.eup %1771 }
 0xc39   : > { %v1454_v57 = vmul.f32 %v1772_v53, %v1770_v38 }
 0xc3b   : > { %1455 = vst [vmem:[%s1845_s10] sm:$0xff] %v1454_v57 }
 0xc3c PF: > { %s18_s24 = sadd.s32 1, %s1779_s24  }
 0xc3d   : > { %p15_p5 = scmp.ge.s32.totalorder %s18_s24, 6  }
 0xc3f   :  { %17 = sbr.rel (!%p15_p5) target bundleno = 1 (0x1), region = 87 }

</bundles_post_ra>
